<compile_context>
chip_gen: v6e
topology: v6e:2x2x1
jax: 0.10.0
libtpu: 0.0.40
codegen_flags: <defaults>
</compile_context>

<pallas_src>
import functools

import jax
import jax.numpy as jnp
from jax.experimental import pallas as pl
from jax.experimental.pallas import tpu as pltpu


_OUT_BYTES_PER_PIXEL = 16          # four f32 output planes
_VMEM_TILE_BUDGET = 24 << 20       # double-buffered in+out bytes per tile; fits v7x 32 MiB scoped


def _choose_row_tile(h: int, w: int, n: int, depth_itemsize: int) -> int:
    """Pick a row tile TH dividing H, sized by VMEM budget rather than a fixed cap.

    Preference order:
      1. sublane-aligned tiles (TH % 8 == 0, or the full-H tile),
      2. at least 2 total grid steps (n * H/TH >= 2) so megacore / both v7x TCs get work,
      3. the largest tile (amortizes the ~0.35 us per-grid-step overhead).
    """
    if h <= 1:
        return max(h, 1)
    bytes_per_row = 2 * (depth_itemsize + _OUT_BYTES_PER_PIXEL) * w      # x2: double-buffered
    max_rows = max(1, _VMEM_TILE_BUDGET // max(bytes_per_row, 1))
    divisors = [d for d in range(1, h + 1) if h % d == 0]
    fitting = [d for d in divisors if d <= max_rows] or [1]

    def score(th):
        return (th % 8 == 0 or th == h,    # sublane-aligned (or full-height) tile
                n * (h // th) >= 2,        # keep both TensorCores busy at batch 1
                th)                        # then biggest

    return max(fitting, key=score)


def _backprojection_kernel(invk_ref, depth_ref, out_ref, *, H, W, TH):
    # invk_ref : SMEM (n*9,)     row-major flattened inv_K[:, :3, :3]
    # depth_ref: VMEM (TH, W)    depth rows (native dtype) for this (batch, row-tile)
    # out_ref  : VMEM (4, TH, W) f32 homogeneous camera points for the same rows
    b = pl.program_id(0)
    r0 = pl.program_id(1) * TH

    d = depth_ref[...].astype(jnp.float32)               # in-kernel upcast (no wrapper pass)

    # Rank-1 normalized pixel grid: a (1, W) lane vector and a (TH, 1) sublane vector.
    sx = 2.0 / (W - 1) if W > 1 else 0.0
    sy = 2.0 / (H - 1) if H > 1 else 0.0
    xx = jax.lax.broadcasted_iota(jnp.int32, (1, W), 1).astype(jnp.float32) * sx - 1.0
    yy = (jax.lax.broadcasted_iota(jnp.int32, (TH, 1), 0).astype(jnp.float32) * sy
          + (r0.astype(jnp.float32) * sy - 1.0))

    base = b * 9
    ik = [invk_ref[base + k] for k in range(9)]           # 9 SMEM scalar reads

    # cam_c = ik0*x + ik1*y + ik2, built as (1,W) col-term + (TH,1) row-term,
    # so the only full-tile VPU work is one add + one mul per pixel per channel.
    for c in range(3):
        col_term = ik[3 * c + 0] * xx                     # (1, W)
        row_term = ik[3 * c + 1] * yy + ik[3 * c + 2]     # (TH, 1)
        out_ref[c, :, :] = d * (col_term + row_term)
    out_ref[3, :, :] = jnp.ones_like(d)


def backprojection(depth, inv_K, height, width, *, row_tile=None):
    """Pallas-fused Backprojection.forward.

    depth: anything reshapeable to (n, H, W) (any float dtype); inv_K: (n, 4, 4) or (n, 3, 3).
    Returns cam_p_h: (n, 4, H*W) float32.
    """
    H, W = int(height), int(width)
    n = depth.shape[0]
    depth3 = depth.reshape(n, H, W)                              # metadata-only, native dtype
    invk_flat = inv_K[:, :3, :3].astype(jnp.float32).reshape(n * 9)

    itemsize = jnp.dtype(depth3.dtype).itemsize
    TH = int(row_tile) if row_tile is not None else _choose_row_tile(H, W, n, itemsize)
    assert H % TH == 0, (H, TH)

    # Explicit scoped-VMEM limit: big enough for the double-buffered tile on every generation
    # (v5e default 16 MiB / v6e+v7x 32 MiB), capped well under v7x's 64 MiB physical VMEM.
    tile_bytes = 2 * TH * W * (itemsize + _OUT_BYTES_PER_PIXEL)
    vmem_limit = int(min(48 << 20, max(32 << 20, tile_bytes + (4 << 20))))

    cost = pl.CostEstimate(
        flops=9 * n * H * W,
        transcendentals=0,
        bytes_accessed=n * H * W * (itemsize + _OUT_BYTES_PER_PIXEL) + 4 * n * 9,
    )

    out4 = pl.pallas_call(
        functools.partial(_backprojection_kernel, H=H, W=W, TH=TH),
        out_shape=jax.ShapeDtypeStruct((n, 4, H, W), jnp.float32),
        grid_spec=pltpu.PrefetchScalarGridSpec(
            num_scalar_prefetch=0,
            grid=(n, H // TH),
            in_specs=[
                # Flat (n*9,) inverse intrinsics: tiny, whole array resident in SMEM.
                pl.BlockSpec(memory_space=pltpu.MemorySpace.SMEM),
                # Depth rows: batch dim squeezed, lanes = W.
                pl.BlockSpec((None, TH, W), lambda b, r: (b, r, 0)),
            ],
            out_specs=pl.BlockSpec((None, 4, TH, W), lambda b, r: (b, 0, r, 0)),
        ),
        compiler_params=pltpu.CompilerParams(
            dimension_semantics=("parallel", "parallel"),
            vmem_limit_bytes=vmem_limit),
        cost_estimate=cost,
    )(invk_flat, depth3)

    return out4.reshape(n, 4, H * W)


class Backprojection:
    """Thin functional mirror of the PyTorch module."""

    def __init__(self, height, width):
        self.H, self.W = height, width

    def __call__(self, depth, inv_K):
        return backprojection(depth, inv_K, self.H, self.W)


# ----------------------------------------------------------------------------
# Pure-JAX reference (mirrors the PyTorch module) for correctness checking.
# ----------------------------------------------------------------------------
def backprojection_reference(depth, inv_K, height, width):
    H, W = height, width
    n = depth.shape[0]
    yy, xx = jnp.meshgrid(jnp.linspace(-1.0, 1.0, H), jnp.linspace(-1.0, 1.0, W),
                          indexing="ij")
    coord = jnp.stack([xx.reshape(-1), yy.reshape(-1),
                       jnp.ones(H * W, jnp.float32)], axis=0)            # (3, H*W)
    cam_p_norm = jnp.einsum("nij,njk->nik", inv_K[:, :3, :3],
                            jnp.broadcast_to(coord, (n, 3, H * W)),
                            precision=jax.lax.Precision.HIGHEST)
    cam_p_euc = depth.reshape(n, 1, H * W).astype(jnp.float32) * cam_p_norm
    ones = jnp.ones((n, 1, H * W), jnp.float32)
    return jnp.concatenate([cam_p_euc, ones], axis=1)                    # (n, 4, H*W)


# ----------------------------------------------------------------------------
if __name__ == "__main__":
    key = jax.random.PRNGKey(0)
    n, H, W = 2, 16, 16
    k_d, k_f, k_c = jax.random.split(key, 3)

    depth = jax.random.uniform(k_d, (n, 1, H, W), jnp.float32, 0.1, 2.0)

    # Synthetic intrinsics -> inv_K (4x4, as the module's caller provides).
    f = jax.random.uniform(k_f, (n, 2), jnp.float32, 0.8, 1.2)
    c = jax.random.uniform(k_c, (n, 2), jnp.float32, -0.1, 0.1)
    K = jnp.tile(jnp.eye(4, dtype=jnp.float32)[None], (n, 1, 1))
    K = K.at[:, 0, 0].set(f[:, 0]).at[:, 1, 1].set(f[:, 1])
    K = K.at[:, 0, 2].set(c[:, 0]).at[:, 1, 2].set(c[:, 1])
    inv_K = jnp.linalg.inv(K)

    model = Backprojection(H, W)

    # f32 depth path.
    cam_p_h = jax.block_until_ready(model(depth, inv_K))
    assert cam_p_h.shape == (n, 4, H * W), cam_p_h.shape
    ref = jax.block_until_ready(backprojection_reference(depth, inv_K, H, W))
    assert bool(jnp.allclose(cam_p_h, ref, rtol=1e-5, atol=1e-5)), "mismatch vs reference (f32)"

    # bf16 depth path exercises the in-kernel upcast (no wrapper-side astype pass).
    depth_bf16 = depth.astype(jnp.bfloat16)
    cam_p_h_bf16 = jax.block_until_ready(model(depth_bf16, inv_K))
    ref_bf16 = backprojection_reference(depth_bf16.astype(jnp.float32), inv_K, H, W)
    assert bool(jnp.allclose(cam_p_h_bf16, ref_bf16, rtol=1e-5, atol=1e-5)), "mismatch (bf16)"

    print("KERNEL_OK")
</pallas_src>

<mosaic_0001>
module attributes {stable_mosaic.version = 11 : i64} {
  func.func @_backprojection_kernel(%arg0: i32, %arg1: i32, %arg2: memref<18xf32, #tpu.memory_space<smem>>, %arg3: memref<1x16x16xf32, #tpu.memory_space<vmem>>, %arg4: memref<1x4x16x16xf32, #tpu.memory_space<vmem>>) attributes {dimension_semantics = [#tpu.dimension_semantics<parallel>, #tpu.dimension_semantics<parallel>], iteration_bounds = array<i64: 2, 1>, scalar_prefetch = 0 : i64, scratch_operands = 0 : i64, tpu.core_type = #tpu.core_type<tc>, window_params = [{transform_indices = @transform_0, window_bounds = array<i64: 18>}, {transform_indices = @transform_1, window_bounds = array<i64: 1, 16, 16>}, {transform_indices = @transform_2, window_bounds = array<i64: 1, 4, 16, 16>}]} {
    %c16_i32 = arith.constant 16 : i32
    %0 = arith.muli %arg1, %c16_i32 : i32
    %c0 = arith.constant 0 : index
    %c0_0 = arith.constant 0 : index
    %c0_1 = arith.constant 0 : index
    %1 = vector.load %arg3[%c0, %c0_0, %c0_1] : memref<1x16x16xf32, #tpu.memory_space<vmem>>, vector<1x16x16xf32>
    %2 = vector.shape_cast %1 : vector<1x16x16xf32> to vector<16x16xf32>
    %3 = tpu.iota {dimensions = array<i32: 1>} : vector<1x16xi32>
    %4 = arith.sitofp %3 : vector<1x16xi32> to vector<1x16xf32>
    %cst = arith.constant 0.13333334 : f32
    %5 = vector.broadcast %cst : f32 to vector<1x16xf32>
    %6 = arith.mulf %4, %5 : vector<1x16xf32>
    %cst_2 = arith.constant 1.000000e+00 : f32
    %7 = vector.broadcast %cst_2 : f32 to vector<1x16xf32>
    %8 = arith.subf %6, %7 : vector<1x16xf32>
    %9 = tpu.iota {dimensions = array<i32: 0>} : vector<16x1xi32>
    %10 = arith.sitofp %9 : vector<16x1xi32> to vector<16x1xf32>
    %cst_3 = arith.constant 0.13333334 : f32
    %11 = vector.broadcast %cst_3 : f32 to vector<16x1xf32>
    %12 = arith.mulf %10, %11 : vector<16x1xf32>
    %13 = arith.sitofp %0 : i32 to f32
    %cst_4 = arith.constant 0.13333334 : f32
    %14 = arith.mulf %13, %cst_4 : f32
    %cst_5 = arith.constant 1.000000e+00 : f32
    %15 = arith.subf %14, %cst_5 : f32
    %16 = vector.broadcast %15 : f32 to vector<16x1xf32>
    %17 = arith.addf %12, %16 : vector<16x1xf32>
    %c9_i32 = arith.constant 9 : i32
    %18 = arith.muli %arg0, %c9_i32 : i32
    %c0_i32 = arith.constant 0 : i32
    %19 = arith.addi %18, %c0_i32 : i32
    %20 = arith.index_cast %19 : i32 to index
    %21 = memref.load %arg2[%20] : memref<18xf32, #tpu.memory_space<smem>>
    %c1_i32 = arith.constant 1 : i32
    %22 = arith.addi %18, %c1_i32 : i32
    %23 = arith.index_cast %22 : i32 to index
    %24 = memref.load %arg2[%23] : memref<18xf32, #tpu.memory_space<smem>>
    %c2_i32 = arith.constant 2 : i32
    %25 = arith.addi %18, %c2_i32 : i32
    %26 = arith.index_cast %25 : i32 to index
    %27 = memref.load %arg2[%26] : memref<18xf32, #tpu.memory_space<smem>>
    %c3_i32 = arith.constant 3 : i32
    %28 = arith.addi %18, %c3_i32 : i32
    %29 = arith.index_cast %28 : i32 to index
    %30 = memref.load %arg2[%29] : memref<18xf32, #tpu.memory_space<smem>>
    %c4_i32 = arith.constant 4 : i32
    %31 = arith.addi %18, %c4_i32 : i32
    %32 = arith.index_cast %31 : i32 to index
    %33 = memref.load %arg2[%32] : memref<18xf32, #tpu.memory_space<smem>>
    %c5_i32 = arith.constant 5 : i32
    %34 = arith.addi %18, %c5_i32 : i32
    %35 = arith.index_cast %34 : i32 to index
    %36 = memref.load %arg2[%35] : memref<18xf32, #tpu.memory_space<smem>>
    %c6_i32 = arith.constant 6 : i32
    %37 = arith.addi %18, %c6_i32 : i32
    %38 = arith.index_cast %37 : i32 to index
    %39 = memref.load %arg2[%38] : memref<18xf32, #tpu.memory_space<smem>>
    %c7_i32 = arith.constant 7 : i32
    %40 = arith.addi %18, %c7_i32 : i32
    %41 = arith.index_cast %40 : i32 to index
    %42 = memref.load %arg2[%41] : memref<18xf32, #tpu.memory_space<smem>>
    %c8_i32 = arith.constant 8 : i32
    %43 = arith.addi %18, %c8_i32 : i32
    %44 = arith.index_cast %43 : i32 to index
    %45 = memref.load %arg2[%44] : memref<18xf32, #tpu.memory_space<smem>>
    %46 = vector.broadcast %21 : f32 to vector<1x16xf32>
    %47 = arith.mulf %46, %8 : vector<1x16xf32>
    %48 = vector.broadcast %24 : f32 to vector<16x1xf32>
    %49 = arith.mulf %48, %17 : vector<16x1xf32>
    %50 = vector.broadcast %27 : f32 to vector<16x1xf32>
    %51 = arith.addf %49, %50 : vector<16x1xf32>
    %52 = vector.broadcast %47 : vector<1x16xf32> to vector<16x16xf32>
    %53 = vector.broadcast %51 : vector<16x1xf32> to vector<16x16xf32>
    %54 = arith.addf %52, %53 : vector<16x16xf32>
    %55 = arith.mulf %2, %54 : vector<16x16xf32>
    %c0_6 = arith.constant 0 : index
    %c0_7 = arith.constant 0 : index
    %c0_8 = arith.constant 0 : index
    %c0_9 = arith.constant 0 : index
    %56 = vector.load %arg4[%c0_6, %c0_7, %c0_8, %c0_9] : memref<1x4x16x16xf32, #tpu.memory_space<vmem>>, vector<1x1x16x16xf32>
    %57 = vector.shape_cast %56 : vector<1x1x16x16xf32> to vector<16x16xf32>
    %58 = vector.shape_cast %55 : vector<16x16xf32> to vector<1x1x16x16xf32>
    tpu.vector_store %arg4[%c0_6, %c0_7, %c0_8, %c0_9], %58 {strides = array<i32>} : memref<1x4x16x16xf32, #tpu.memory_space<vmem>>, vector<1x1x16x16xf32>,
    %59 = vector.broadcast %30 : f32 to vector<1x16xf32>
    %60 = arith.mulf %59, %8 : vector<1x16xf32>
    %61 = vector.broadcast %33 : f32 to vector<16x1xf32>
    %62 = arith.mulf %61, %17 : vector<16x1xf32>
    %63 = vector.broadcast %36 : f32 to vector<16x1xf32>
    %64 = arith.addf %62, %63 : vector<16x1xf32>
    %65 = vector.broadcast %60 : vector<1x16xf32> to vector<16x16xf32>
    %66 = vector.broadcast %64 : vector<16x1xf32> to vector<16x16xf32>
    %67 = arith.addf %65, %66 : vector<16x16xf32>
    %68 = arith.mulf %2, %67 : vector<16x16xf32>
    %c0_10 = arith.constant 0 : index
    %c1 = arith.constant 1 : index
    %c0_11 = arith.constant 0 : index
    %c0_12 = arith.constant 0 : index
    %69 = vector.load %arg4[%c0_10, %c1, %c0_11, %c0_12] : memref<1x4x16x16xf32, #tpu.memory_space<vmem>>, vector<1x1x16x16xf32>
    %70 = vector.shape_cast %69 : vector<1x1x16x16xf32> to vector<16x16xf32>
    %71 = vector.shape_cast %68 : vector<16x16xf32> to vector<1x1x16x16xf32>
    tpu.vector_store %arg4[%c0_10, %c1, %c0_11, %c0_12], %71 {strides = array<i32>} : memref<1x4x16x16xf32, #tpu.memory_space<vmem>>, vector<1x1x16x16xf32>,
    %72 = vector.broadcast %39 : f32 to vector<1x16xf32>
    %73 = arith.mulf %72, %8 : vector<1x16xf32>
    %74 = vector.broadcast %42 : f32 to vector<16x1xf32>
    %75 = arith.mulf %74, %17 : vector<16x1xf32>
    %76 = vector.broadcast %45 : f32 to vector<16x1xf32>
    %77 = arith.addf %75, %76 : vector<16x1xf32>
    %78 = vector.broadcast %73 : vector<1x16xf32> to vector<16x16xf32>
    %79 = vector.broadcast %77 : vector<16x1xf32> to vector<16x16xf32>
    %80 = arith.addf %78, %79 : vector<16x16xf32>
    %81 = arith.mulf %2, %80 : vector<16x16xf32>
    %c0_13 = arith.constant 0 : index
    %c2 = arith.constant 2 : index
    %c0_14 = arith.constant 0 : index
    %c0_15 = arith.constant 0 : index
    %82 = vector.load %arg4[%c0_13, %c2, %c0_14, %c0_15] : memref<1x4x16x16xf32, #tpu.memory_space<vmem>>, vector<1x1x16x16xf32>
    %83 = vector.shape_cast %82 : vector<1x1x16x16xf32> to vector<16x16xf32>
    %84 = vector.shape_cast %81 : vector<16x16xf32> to vector<1x1x16x16xf32>
    tpu.vector_store %arg4[%c0_13, %c2, %c0_14, %c0_15], %84 {strides = array<i32>} : memref<1x4x16x16xf32, #tpu.memory_space<vmem>>, vector<1x1x16x16xf32>,
    %cst_16 = arith.constant 1.000000e+00 : f32
    %85 = vector.broadcast %cst_16 : f32 to vector<16x16xf32>
    %c0_17 = arith.constant 0 : index
    %c3 = arith.constant 3 : index
    %c0_18 = arith.constant 0 : index
    %c0_19 = arith.constant 0 : index
    %86 = vector.load %arg4[%c0_17, %c3, %c0_18, %c0_19] : memref<1x4x16x16xf32, #tpu.memory_space<vmem>>, vector<1x1x16x16xf32>
    %87 = vector.shape_cast %86 : vector<1x1x16x16xf32> to vector<16x16xf32>
    %88 = vector.shape_cast %85 : vector<16x16xf32> to vector<1x1x16x16xf32>
    tpu.vector_store %arg4[%c0_17, %c3, %c0_18, %c0_19], %88 {strides = array<i32>} : memref<1x4x16x16xf32, #tpu.memory_space<vmem>>, vector<1x1x16x16xf32>,
    return
  }
  func.func @transform_0(%arg0: i32, %arg1: i32) -> i32 {
    %c0_i32 = arith.constant 0 : i32
    %c0_i32_0 = arith.constant 0 : i32
    return %c0_i32 : i32
  }
  func.func @transform_1(%arg0: i32, %arg1: i32) -> (i32, i32, i32) {
    %c0_i32 = arith.constant 0 : i32
    %c0_i32_0 = arith.constant 0 : i32
    return %arg0, %arg1, %c0_i32 : i32, i32, i32
  }
  func.func @transform_2(%arg0: i32, %arg1: i32) -> (i32, i32, i32, i32) {
    %c0_i32 = arith.constant 0 : i32
    %c0_i32_0 = arith.constant 0 : i32
    %c0_i32_1 = arith.constant 0 : i32
    return %arg0, %c0_i32, %arg1, %c0_i32_0 : i32, i32, i32, i32
  }
}

</mosaic_0001>

<bundles_post_ra>
// kernel: tpu_custom_call.1
= control target key start
LH: loop header
LB: loop body
LE: loop exit
PB: predicated region body
PF: predicated region fallthrough
CT: control target
= control target key end

     0   :  { %s856_s0 = inlined_call_operand.hbm [shape: f32[18], index: 0, kind: input, shape index: {}]   ;;  %s857_s1 = inlined_call_operand.hbm [shape: f32[2,16,16], index: 1, kind: input, shape index: {}]   ;;  %s858_s2 = inlined_call_operand.hbm [shape: f32[2,4,16,16], index: 2, kind: output, shape index: {}]  }
   0x1   :  { %859 = sst [smem:[#allocation11_spill]] %s856_s0 }
   0x2   :  { %7 = vsyncpa [#allocation5], 0 }
   0x3   :  { %8 = vsyncpa [#allocation3], 0 }
   0x4   :  { %10 = vsyncpa [#allocation3 + $0x1], 0 }
   0x5   :  { %11 = vsyncpa [#allocation4], 0 }
   0x6   :  { %13 = vsyncpa [#allocation4 + $0x1], 0  ;;  %s648_s9 = smov 0   ;;  %s650_s10 = smov 0  }
   0x7   :  { %s652_s11 = smov 0   ;;  %s654_s12 = smov 0  }
   0x8   :  { %s656_s13 = smov 0   ;;  %s658_s14 = smov 0  }
   0x9 LB: > { %s396_s15 = sadd.s32 4294967295, %s623_s14   ;;  %s397_s16 = sadd.s32 4294967294, %s623_s14   ;;  %s623_s14 = sphi %s658_s14, %s19_s14   ;;  %s619_s13 = sphi %s656_s13, %s873_s13   ;;  %s615_s12 = sphi %s654_s12, %s872_s12   ;;  %s611_s11 = sphi %s652_s11, %s871_s11   ;;  %s607_s10 = sphi %s650_s10, %s870_s10   ;;  %s603_s9 = sphi %s648_s9, %s869_s9  }
   0xa   : > { %s61_s17 = sadd.s32 1, %s611_s11  ;;  %p68_p0 = scmp.ne.s32.totalorder %s611_s11, %s607_s10 }
   0xb   : > { %p69_p1 = scmp.eq.s32.totalorder %s623_s14, 0  ;;  %p74_p2 = scmp.ne.s32.totalorder %s607_s10, %s603_s9 }
   0xc   : > { %p686_p3 = scmp.eq.s32.totalorder %s396_s15, 0  ;;  %p100_p4 = scmp.eq.s32.totalorder %s396_s15, 1 }
   0xd   : > { %p70_p5 = por %p69_p1, %p68_p0  ;;  %p106_p6 = scmp.eq.s32.totalorder %s397_s16, 1 }
   0xe   : > { %p692_p7 = por %p686_p3, %p74_p2  ;;  %p696_p8 = por %p100_p4, %p68_p0 }
   0xf   : > { %p700_p9 = por %p106_p6, %p74_p2  ;;  %p398_p10 = scmp.ge.s32.totalorder %s623_s14, 1 }
  0x10   : > { %p113_p11 = scmp.lt.s32.totalorder %s623_s14, 3  ;;  %p443_p1 = scmp.lt.s32.totalorder %s623_s14, 2 }
  0x11   : > { %s863_s21 = scalar_select %p700_p9, 1, 0 }
  0x12   : > { %p707_p13 = pnand %p398_p10, %p113_p11  ;;  %s135_s23 = sand.u32 1, %s611_s11  }
  0x13   : > { %p715_p2 = pnand %p443_p1, %p70_p5  ;;  %s31_s25 = sadd.s32 1, %s619_s13 }
  0x14   : > { %p430_p0 = pneg %p707_p13  ;;  %s401_s26 = sshll.u32 %s135_s23, 4 }
  0x15   : > { %p33_p6 = scmp.ge.s32.totalorder %s31_s25, 2  ;;  %s625_s27 = smov [#allocation2]  }
  0x16   : > { %p431_p4 = pnand %p430_p0, %p686_p3  ;;  %s866_s0 = sld [smem:[#allocation11_spill]] }
  0x17   : > { %s875_s25 = smov (%p33_p6, %s31_s25), 0  ;;  %s420_s30 = sshll.u32 %s619_s13, 8 }
  0x18   : > { %s56_s3 = ssub.s32 %s619_s13, %s875_s25  ;;  %s147_s6 = scalar_lea.hbm %s857_s1, %s420_s30 }
  0x19   : > { %p59_p5 = scmp.eq.s32.totalorder %s56_s3, 0  ;;  %s139_s7 = scalar_lea.vmem [#allocation6], %s401_s26 }
  0x1a   : > { %s148_s8 = sshll.u32 %s139_s7, 4  ;;  %s136_s16 = scalar_lea.sflag [#allocation3], %s135_s23  ;;  %s149_s8 = int_to_ptr.vmem [resolvable:$true] %s148_s8 }
  0x1b   : > { %s736_s15 = scalar_select %p59_p5, %s611_s11, %s61_s17  }
  0x1c   : > { %433 = dma.hbm_to_smem (!%p431_p4), %s866_s0, 16, %s625_s27, [#allocation5]  }
  0x1d   : > { %p513_p10 = pneg %p715_p2  ;;  %s524_s27 = scalar_lea.vmem %s149_s8, 256 }
  0x1e   : > { %p525_p11 = scmp.ne.s32.totalorder %s149_s8, %s524_s27  ;;  %s626_s28 = smov [#allocation6]  }
  0x1f   : > { %s529_s29 = sshll.u32 %s626_s28, 4  ;;  %s530_s29 = int_to_ptr.vmem [resolvable:$false] %s529_s29 }
  0x20   : > { %p527_p1 = pnand %p525_p11, %p513_p10  ;;  %s531_s0 = scalar_lea.vmem %s530_s29, 512 }
  0x21   : > { %p532_p4 = scmp.lt.s32.totalorder %s149_s8, %s530_s29  ;;  %p533_p6 = scmp.lt.s32.totalorder %s531_s0, %s524_s27 }
  0x22   : > { %p528_p0 = pneg %p527_p1 }
  0x23   : > { %p534_p12 = por %p533_p6, %p532_p4 }
  0x25   : > { %p535_p9 = pnand %p534_p12, %p528_p0 }
  0x27   : > { %538 = shalt.err (!%p535_p9)
}
  0x28   : > { %s627_s26 = smov 128   ;;  %s628_s17 = smov 8  }
  0x29   : > { %437 = dma.hbm_to_vmem [thread:$0]  (!%p715_p2), %s147_s6, 256, %s149_s8, %s136_s16, %s627_s26, %s627_s26, %s628_s17  }
  0x2a   : > { %160 = sbr.rel (%p707_p13) target bundleno = 93 (0x5d), region = 28 }
  0x2f   : > { %590 = dma.done.wait (%p686_p3), [#allocation5], 16  }
  0x30   : > { %592 = vsyncadd (%p686_p3), [#allocation5], 4294967280  ;;  %s749_s0 = sand.u32 1, %s607_s10  }
  0x31   : > { %s406_s23 = sshll.u32 %s749_s0, 4  ;;  %s167_s30 = scalar_lea.sflag [#allocation3], %s749_s0 }
  0x32   : > { %s753_s3 = scalar_lea.vmem [#allocation6], %s406_s23 }
  0x33   : > { %594 = dma.done.wait (%p692_p7), %s167_s30, 256  }
  0x34   : > { %596 = vsyncadd (%p692_p7), %s167_s30, 4294967040 }
  0x35   : > { %175 = sfence }
  0x36   : > { %s407_s18 = sshll.u32 %s749_s0, 6  ;;  %v197_v0 = vlaneseq  ;;  %s761_s22 = smul.u32 9, %s615_s12  ;;  %vm245_vm0 = vcmask 130048   ;;  %v629_v3 = vmov 1.0   ;;  %v195_v22 = vld [vmem:[%s753_s3] sm:$0xff]  ;;  %v196_v29 = vld [vmem:[%s753_s3 + $0x8] sm:$0xff] }
  0x37   : > { %s765_s5 = scalar_lea.vmem [#allocation7], %s407_s18 }
  0x38   : > { %v198_v1 = vand.u32 127, %v197_v0  ;;  %v203_v2 = vshrl.u32 %v197_v0, 7  ;;  %s216_s24 = sld [smem:[#allocation2 + %s761_s22]]  ;;  %s217_s4 = sadd.s32 1, %s761_s22  ;;  %413 = vst.msk [vmem:[%s765_s5 + $0x30] sm:$0xff] %vm245_vm0, %v629_v3  ;;  %414 = vst.msk [vmem:[%s765_s5 + $0x38] sm:$0xff] %vm245_vm0, %v629_v3 }
  0x39   : > { %s771_s19 = sld [smem:[#allocation2 + %s217_s4]]  ;;  %s219_s6 = sadd.s32 2, %s761_s22 }
  0x3a   : > { %v199_v4 = vcvt.s32.f32 %v198_v1  ;;  %v205_v5 = vcvt.s32.f32 %v203_v2  ;;  %s774_s7 = sld [smem:[#allocation2 + %s219_s6]]  ;;  %v204_v6 = vadd.s32 8, %v203_v2  ;;  %s221_s8 = sadd.s32 3, %s761_s22 }
  0x3b   : > { %s222_s16 = sld [smem:[#allocation2 + %s221_s8]]  ;;  %s223_s27 = sadd.s32 4, %s761_s22 }
  0x3c   : > { %v200_v7 = vmul.f32 0.13333334, %v199_v4  ;;  %v207_v8 = vmul.f32 0.13333334, %v205_v5  ;;  %v206_v9 = vcvt.s32.f32 %v204_v6  ;;  %s224_s28 = sld [smem:[#allocation2 + %s223_s27]]  ;;  %s225_s29 = sadd.s32 5, %s761_s22 }
  0x3d   : > { %s226_s26 = sld [smem:[#allocation2 + %s225_s29]]  ;;  %s227_s17 = sadd.s32 6, %s761_s22 }
  0x3e   : > { %v408_v10 = vadd.f32 -1.0, %v200_v7  ;;  %v213_v11 = vadd.f32 -1.0, %v207_v8  ;;  %v233_v12 = vstv %s216_s24  ;;  %v208_v13 = vmul.f32 0.13333334, %v206_v9  ;;  %s228_s23 = sld [smem:[#allocation2 + %s227_s17]]  ;;  %s229_s30 = sadd.s32 7, %s761_s22 }
  0x3f   : > { %v235_v14 = vstv %s771_s19  ;;  %s230_s18 = sld [smem:[#allocation2 + %s229_s30]]  ;;  %s231_s4 = sadd.s32 8, %s761_s22 }
  0x40   : > { %v234_v15 = vmul.f32 %v408_v10, %v233_v12  ;;  %v236_v16 = vmul.f32 %v235_v14, %v213_v11  ;;  %v238_v17 = vstv %s774_s7  ;;  %v214_v18 = vadd.f32 -1.0, %v208_v13  ;;  %s784_s6 = sld [smem:[#allocation2 + %s231_s4]]  ;;  %s297_s3 = sshll.u32 %s765_s5, 4  ;;  %s797_s3 = int_to_ptr.vmem [resolvable:$true] %s297_s3 }
  0x41   : > { %v248_v21 = vstv %s222_s16  ;;  %s421_s22 = sshll.u32 %s615_s12, 10  ;;  %s282_s12 = scalar_lea.sflag [#allocation4], %s749_s0 }
  0x42   : > { %v239_v19 = vadd.f32 %v238_v17, %v236_v16  ;;  %v237_v20 = vmul.f32 %v235_v14, %v214_v18  ;;  %v249_v23 = vmul.f32 %v408_v10, %v248_v21  ;;  %v250_v24 = vstv %s224_s28  ;;  %s804_s7 = scalar_lea.hbm %s858_s2, %s421_s22  ;;  %s539_s8 = scalar_lea.vmem %s797_s3, 1024 }
  0x43   : > { %v251_v27 = vmul.f32 %v250_v24, %v213_v11  ;;  %v253_v28 = vstv %s226_s26  ;;  %v252_v30 = vmul.f32 %v250_v24, %v214_v18  ;;  %p540_p3 = scmp.ne.s32.totalorder %s797_s3, %s539_s8  ;;  %s630_s16 = smov [#allocation7]  }
  0x44   : > { %v241_v25 = vadd.f32 %v239_v19, %v234_v15  ;;  %v240_v26 = vadd.f32 %v238_v17, %v237_v20  ;;  %v263_v31 = vstv %s228_s23  ;;  %s543_s27 = sshll.u32 %s630_s16, 4  ;;  %s544_s27 = int_to_ptr.vmem [resolvable:$false] %s543_s27 }
  0x45   : > { %v254_v34 = vadd.f32 %v253_v28, %v251_v27  ;;  %v255_v35 = vadd.f32 %v253_v28, %v252_v30  ;;  %v264_v36 = vmul.f32 %v408_v10, %v263_v31  ;;  %v265_v37 = vstv %s230_s18  ;;  %p541_p7 = pnand %p540_p3, %p696_p8  ;;  %s545_s28 = scalar_lea.vmem %s544_s27, 2048 }
  0x46   : > { %v243_v32 = vmul.f32 %v241_v25, %v195_v22  ;;  %v242_v33 = vadd.f32 %v240_v26, %v234_v15  ;;  %v268_v38 = vstv %s784_s6  ;;  %v266_v41 = vmul.f32 %v265_v37, %v213_v11  ;;  %p546_p12 = scmp.lt.s32.totalorder %s797_s3, %s544_s27  ;;  %p547_p13 = scmp.lt.s32.totalorder %s545_s28, %s539_s8 }
  0x47   : > { %v256_v40 = vadd.f32 %v254_v34, %v249_v23  ;;  %v267_v42 = vmul.f32 %v265_v37, %v214_v18  ;;  %v257_v43 = vadd.f32 %v255_v35, %v249_v23  ;;  %p542_p9 = pneg %p541_p7 }
  0x48   : > { %246 = vst.msk [vmem:[%s765_s5] sm:$0xff] %vm245_vm0, %v243_v32  ;;  %v244_v39 = vmul.f32 %v242_v33, %v196_v29  ;;  %v269_v45 = vadd.f32 %v268_v38, %v266_v41  ;;  %p548_p2 = por %p547_p13, %p546_p12 }
  0x49   : > { %v258_v44 = vmul.f32 %v256_v40, %v195_v22  ;;  %v270_v46 = vadd.f32 %v268_v38, %v267_v42  ;;  %v259_v47 = vmul.f32 %v257_v43, %v196_v29 }
  0x4a   : > { %247 = vst.msk [vmem:[%s765_s5 + $0x8] sm:$0xff] %vm245_vm0, %v244_v39  ;;  %v271_v48 = vadd.f32 %v269_v45, %v264_v36  ;;  %p549_p5 = pnand %p548_p2, %p542_p9 }
  0x4b   : > { %409 = vst.msk [vmem:[%s765_s5 + $0x10] sm:$0xff] %vm245_vm0, %v258_v44  ;;  %v272_v49 = vadd.f32 %v270_v46, %v264_v36  ;;  %410 = vst.msk [vmem:[%s765_s5 + $0x18] sm:$0xff] %vm245_vm0, %v259_v47 }
  0x4c   : > { %v273_v50 = vmul.f32 %v271_v48, %v195_v22 }
  0x4d   : > { %v274_v51 = vmul.f32 %v272_v49, %v196_v29 }
  0x4e   : > { %411 = vst.msk [vmem:[%s765_s5 + $0x20] sm:$0xff] %vm245_vm0, %v273_v50 }
  0x4f   : > { %412 = vst.msk [vmem:[%s765_s5 + $0x28] sm:$0xff] %vm245_vm0, %v274_v51 }
  0x50   : > { %552 = shalt.err (!%p549_p5)
}
  0x51   : > { %s553_s5 = scalar_lea.hbm %s804_s7, 1024  ;;  %s557_s17 = scalar_lea.hbm %s858_s2, 2048 }
  0x52   : > { %p554_p10 = scmp.ne.s32.totalorder %s804_s7, %s553_s5  ;;  %p558_p0 = scmp.lt.s32.totalorder %s804_s7, %s858_s2 }
  0x53   : > { %p559_p4 = scmp.lt.s32.totalorder %s557_s17, %s553_s5 }
  0x54   : > { %p555_p11 = pnand %p554_p10, %p696_p8 }
  0x55   : > { %p560_p6 = por %p559_p4, %p558_p0 }
  0x56   : > { %p556_p1 = pneg %p555_p11 }
  0x58   : > { %p561_p3 = pnand %p560_p6, %p556_p1 }
  0x5a   : > { %564 = shalt.err (!%p561_p3)
}
  0x5b   : > { %s631_s18 = smov 128   ;;  %s632_s4 = smov 8  }
  0x5c   : > { %428 = dma.vmem_to_hbm [thread:$0]  (%p696_p8), %s797_s3, 1024, %s804_s7, %s282_s12, %s631_s18, %s631_s18, %s632_s4  }
  0x5d PF: > { %s312_s6 = sand.u32 1, %s603_s9   ;;  %p867_p7 = scmp.ne.s32.totalorder %s863_s21, 0 }
  0x5e   : > { %p868_p9 = scmp.ge.s32.totalorder %s623_s14, 2  ;;  %s313_s22 = scalar_lea.sflag [#allocation4], %s312_s6 }
  0x60   : > { %p439_p12 = pnand %p868_p9, %p867_p7 }
  0x62   : > { %p440_p13 = pneg %p439_p12 }
  0x64   : > { %598 = dma.done.wait (%p440_p13), %s313_s22, 1024  }
  0x65   : > { %600 = vsyncadd (%p440_p13), %s313_s22, 4294966272  ;;  %s19_s14 = sadd.s32 1, %s623_s14   ;;  %s869_s9 = smov %s607_s10 }
  0x66   : > { %p16_p2 = scmp.ge.s32.totalorder %s19_s14, 4   ;;  %s870_s10 = smov %s611_s11 }
  0x67   : > { %s871_s11 = smov %s736_s15  ;;  %s872_s12 = smov %s619_s13 }
  0x68   : > { %s873_s13 = smov %s875_s25  ;;  %18 = sbr.rel (!%p16_p2) target bundleno = 9 (0x9), region = 81 }
  0x6d   :  { %318 = vsyncpa [#allocation3], 1 }
  0x6e   :  { %320 = vsyncpa [#allocation3 + $0x1], 1 }
  0x6f   :  { %321 = vsyncpa [#allocation4], 1 }
  0x70   :  { %323 = vsyncpa [#allocation4 + $0x1], 1 }
  0x71   :  { %324 = vsyncpa [#allocation5], 1 }
  0x72   :  { %326 = vsyncpa [#allocation5 + $0x1], 1 }

</bundles_post_ra>
